<compile_context>
chip_gen: v7x
topology: tpu7x:2x2x1
jax: 0.10.0
libtpu: 0.0.40
codegen_flags: <defaults>
</compile_context>

<pallas_src>
import functools
import math

import jax
import jax.numpy as jnp
from jax import lax
from jax.experimental import pallas as pl
from jax.experimental.pallas import tpu as pltpu


def _mlp_attention(avg, mx, w1a, w1b, b1, w2, b2):
    """sigmoid(relu(concat([avg, max]) @ W1 + b1) @ W2 + b2), all in f32.

    concat([avg, max]) @ W1 is computed as avg @ W1[:C] + max @ W1[C:].
    (A bf16 MXU path would be marginally faster but changes numerics; the MLP
    is negligible next to the streaming cost, so it stays f32.)
    """
    h = (jnp.dot(avg, w1a, preferred_element_type=jnp.float32)
         + jnp.dot(mx, w1b, preferred_element_type=jnp.float32)
         + b1)
    h = jnp.maximum(h, 0.0)
    logits = jnp.dot(h, w2, preferred_element_type=jnp.float32) + b2
    return jax.nn.sigmoid(logits)


# --------------------- fused single-pass kernel (main path) ---------------------

def _ca_fused_kernel(x_ref, w1a_ref, w1b_ref, b1_ref, w2_ref, b2_ref, o_ref,
                     *, inv_hw):
    # x block: [Bt, C, HW]  (NCHW view: HW on lanes -> lane-dense, C on sublanes)
    x = x_ref[...]

    # Global pools over the spatial (lane) axis with f32 accumulation; no
    # whole-block f32 temp.  (The block may be traversed in VMEM more than once
    # for sum/max/scale; VMEM read bandwidth has headroom over the HBM stream.)
    s = jnp.sum(x, axis=2, dtype=jnp.float32)              # [Bt, C]
    mx = jnp.max(x, axis=2).astype(jnp.float32)            # [Bt, C]

    attn = _mlp_attention(s * inv_hw, mx,
                          w1a_ref[...], w1b_ref[...], b1_ref[...],
                          w2_ref[...], b2_ref[...])        # [Bt, C] f32

    # Broadcast the per-channel scale over the lane (spatial) axis.
    scale = attn.astype(x.dtype)[:, :, None]               # [Bt, C, 1]
    o_ref[...] = (x * scale).astype(o_ref.dtype)


# ----------------- spatially-tiled two-pass fallback kernels -----------------

def _ca_pool_kernel(x_ref, w1a_ref, w1b_ref, b1_ref, w2_ref, b2_ref,
                    attn_ref, sum_sc, max_sc, *, hw, t_hw, inv_hw, needs_mask):
    t = pl.program_id(1)

    @pl.when(t == 0)
    def _():
        sum_sc[...] = jnp.zeros_like(sum_sc)
        max_sc[...] = jnp.full_like(max_sc, -jnp.inf)

    x = x_ref[...]                                         # [1, C, t_hw]
    if needs_mask:
        # Last HW tile is partial: mask the padded lanes before reducing.
        pos = t * t_hw + lax.broadcasted_iota(jnp.int32, x.shape, 2)
        valid = pos < hw
        x_sum = jnp.where(valid, x, 0)
        x_max = jnp.where(valid, x, -jnp.inf)
    else:
        x_sum = x
        x_max = x

    sum_sc[...] += jnp.sum(x_sum, axis=2, dtype=jnp.float32)
    max_sc[...] = jnp.maximum(max_sc[...],
                              jnp.max(x_max, axis=2).astype(jnp.float32))

    @pl.when(t == pl.num_programs(1) - 1)
    def _():
        attn = _mlp_attention(sum_sc[...] * inv_hw, max_sc[...],
                              w1a_ref[...], w1b_ref[...], b1_ref[...],
                              w2_ref[...], b2_ref[...])    # [1, C]
        attn_ref[...] = attn.reshape(attn_ref.shape)       # [1, C, 1]


def _ca_scale_kernel(attn_ref, x_ref, o_ref):
    x = x_ref[...]                                         # [1, C, t_hw]
    o_ref[...] = (x * attn_ref[...].astype(x.dtype)).astype(o_ref.dtype)


# --------------------------------- wrapper ---------------------------------

def _vmem_capacity_bytes():
    try:
        info = pltpu.get_tpu_info()
        for name in ("vmem_capacity_bytes", "vmem_bytes"):
            cap = getattr(info, name, None)
            if cap:
                return int(cap)
    except Exception:
        pass
    return 64 * 1024 * 1024          # conservative: v7x per-TensorCore VMEM


def _pick_block_batch(batch, per_batch_bytes, target_bytes, min_steps):
    divisors = [d for d in range(1, batch + 1) if batch % d == 0]
    fitting = [d for d in divisors if d * per_batch_bytes <= target_bytes]
    bt = max(fitting) if fitting else 1
    # Keep at least `min_steps` grid steps when the batch allows it (>= 2 steps
    # per TensorCore on megacore parts so DMA latency is hidden by pipelining).
    want = min(batch, min_steps)
    while batch // bt < want and bt > 1:
        bt = max(d for d in divisors if d < bt)
    return bt


def channel_attention(x, w1, b1, w2, b2, *, target_block_bytes=None,
                      force_tiled=False):
    """x: [B, C, H, W] (NCHW, as in the PyTorch module).

    w1: [2C, inter], b1: [inter], w2: [inter, C], b2: [C] -- weights stored
    "input-major" (pooled @ W), i.e. the transpose of torch.nn.Linear.weight.
    Returns [B, C, H, W].
    """
    B, C, H, W = x.shape
    HW = H * W
    inter = w1.shape[1]
    itemsize = jnp.dtype(x.dtype).itemsize

    vmem_cap = _vmem_capacity_bytes()
    big_vmem = vmem_cap >= 96 * 1024 * 1024      # v5e/v6e (128 MiB) vs v7x (64 MiB)
    if target_block_bytes is None:
        target_block_bytes = (12 if big_vmem else 4) * 1024 * 1024
    vmem_cap_limit = (96 if big_vmem else 48) * 1024 * 1024

    # NCHW view: pure reshape, no data movement (unlike an NHWC transpose).
    x3 = x.reshape(B, C, HW)

    w1a = w1[:C, :]                  # avg-pool branch of the first Linear
    w1b = w1[C:, :]                  # max-pool branch
    b1_2d = b1.reshape(1, inter).astype(jnp.float32)
    b2_2d = b2.reshape(1, C).astype(jnp.float32)
    weights = (w1a, w1b, b1_2d, w2, b2_2d)
    weight_bytes = int(sum(a.size * jnp.dtype(a.dtype).itemsize for a in weights))
    weight_specs = [
        pl.BlockSpec((C, inter), lambda *_: (0, 0)),
        pl.BlockSpec((C, inter), lambda *_: (0, 0)),
        pl.BlockSpec((1, inter), lambda *_: (0, 0)),
        pl.BlockSpec((inter, C), lambda *_: (0, 0)),
        pl.BlockSpec((1, C), lambda *_: (0, 0)),
    ]

    per_batch_bytes = C * HW * itemsize
    fits_resident = per_batch_bytes <= target_block_bytes
    use_tiled = force_tiled or (not fits_resident and HW >= 256)

    if not use_tiled:
        bt = _pick_block_batch(B, per_batch_bytes, target_block_bytes,
                               min_steps=4)
        block_bytes = bt * per_batch_bytes
        # 2x double-buffered in + 2x out + weights + slack for small f32 temps
        # (and a possible f32 conversion of a sub-f32 block inside the sum).
        vmem_limit = int(min(vmem_cap_limit,
                             max(16 * 1024 * 1024,
                                 6 * block_bytes + 2 * weight_bytes + (4 << 20))))
        cost = pl.CostEstimate(
            flops=int(B * (3 * C * HW + 6 * C * inter)),
            transcendentals=int(B * C),
            bytes_accessed=int(2 * B * HW * C * itemsize + 2 * weight_bytes),
        )
        out3 = pl.pallas_call(
            functools.partial(_ca_fused_kernel, inv_hw=1.0 / HW),
            out_shape=jax.ShapeDtypeStruct((B, C, HW), x.dtype),
            grid_spec=pltpu.PrefetchScalarGridSpec(
                num_scalar_prefetch=0,
                grid=(B // bt,),
                in_specs=[pl.BlockSpec((bt, C, HW), lambda b: (b, 0, 0))]
                         + weight_specs,
                out_specs=pl.BlockSpec((bt, C, HW), lambda b: (b, 0, 0)),
            ),
            compiler_params=pltpu.CompilerParams(
                dimension_semantics=("parallel",),
                vmem_limit_bytes=vmem_limit,
            ),
            cost_estimate=cost,
        )(x3, *weights)
        return out3.reshape(B, C, H, W)

    # -------- spatially-tiled two-pass path (per-batch slab too large) --------
    # HW tile: multiple of 128 lanes targeting target_block_bytes, never larger
    # than the largest 128-multiple that fits inside HW.
    t_hw = (target_block_bytes // max(1, C * itemsize)) // 128 * 128
    t_hw = max(128, min(t_hw, max(128, (HW // 128) * 128)))
    n_t = pl.cdiv(HW, t_hw)
    needs_mask = (HW % t_hw) != 0
    tile_bytes = C * t_hw * itemsize
    vmem_limit = int(min(vmem_cap_limit,
                         max(16 * 1024 * 1024,
                             6 * tile_bytes + 2 * weight_bytes + (8 << 20))))

    # Pass 1: accumulate sum/max over HW tiles, emit sigmoid attention [B, C, 1].
    attn = pl.pallas_call(
        functools.partial(_ca_pool_kernel, hw=HW, t_hw=t_hw,
                          inv_hw=1.0 / HW, needs_mask=needs_mask),
        out_shape=jax.ShapeDtypeStruct((B, C, 1), jnp.float32),
        grid_spec=pltpu.PrefetchScalarGridSpec(
            num_scalar_prefetch=0,
            grid=(B, n_t),
            in_specs=[pl.BlockSpec((1, C, t_hw), lambda b, t: (b, 0, t))]
                     + weight_specs,
            out_specs=pl.BlockSpec((1, C, 1), lambda b, t: (b, 0, 0)),
            scratch_shapes=[pltpu.VMEM((1, C), jnp.float32),
                            pltpu.VMEM((1, C), jnp.float32)],
        ),
        compiler_params=pltpu.CompilerParams(
            dimension_semantics=("parallel", "arbitrary"),
            vmem_limit_bytes=vmem_limit,
        ),
    )(x3, *weights)

    # Pass 2: stream x again and apply the per-channel scale.
    out3 = pl.pallas_call(
        _ca_scale_kernel,
        out_shape=jax.ShapeDtypeStruct((B, C, HW), x.dtype),
        grid_spec=pltpu.PrefetchScalarGridSpec(
            num_scalar_prefetch=0,
            grid=(B, n_t),
            in_specs=[
                pl.BlockSpec((1, C, 1), lambda b, t: (b, 0, 0)),
                pl.BlockSpec((1, C, t_hw), lambda b, t: (b, 0, t)),
            ],
            out_specs=pl.BlockSpec((1, C, t_hw), lambda b, t: (b, 0, t)),
        ),
        compiler_params=pltpu.CompilerParams(
            dimension_semantics=("parallel", "parallel"),
            vmem_limit_bytes=vmem_limit,
        ),
    )(attn, x3)
    return out3.reshape(B, C, H, W)


def _reference(x, w1, b1, w2, b2):
    avg = jnp.mean(x, axis=(2, 3))
    mx = jnp.max(x, axis=(2, 3))
    pooled = jnp.concatenate([avg, mx], axis=1)
    h = jnp.maximum(pooled @ w1 + b1, 0.0)
    a = jax.nn.sigmoid(h @ w2 + b2)
    return a[:, :, None, None] * x


if __name__ == "__main__":
    B, C, H, W = 2, 4, 16, 16
    inter = max(C // 16, 8)      # = 8, as in the PyTorch module

    key = jax.random.PRNGKey(0)
    kx, kx2, kw1, kb1, kw2, kb2 = jax.random.split(key, 6)

    x = jax.random.normal(kx, (B, C, H, W), dtype=jnp.float32)

    # torch.nn.Linear-style uniform init, stored input-major (pooled @ W).
    bound1 = 1.0 / math.sqrt(2 * C)
    w1 = jax.random.uniform(kw1, (2 * C, inter), jnp.float32, -bound1, bound1)
    b1 = jax.random.uniform(kb1, (inter,), jnp.float32, -bound1, bound1)
    bound2 = 1.0 / math.sqrt(inter)
    w2 = jax.random.uniform(kw2, (inter, C), jnp.float32, -bound2, bound2)
    b2 = jax.random.uniform(kb2, (C,), jnp.float32, -bound2, bound2)

    # 1) Fused single-pass path (NCHW-resident block, batch-packed).
    out = jax.block_until_ready(channel_attention(x, w1, b1, w2, b2))
    ref = _reference(x, w1, b1, w2, b2)
    assert jnp.allclose(out, ref, atol=1e-5, rtol=1e-5), "fused path mismatch"

    # 2) Ragged spatial extent (H*W = 225: not a multiple of 8 or 128).
    x2 = jax.random.normal(kx2, (B, C, 15, 15), dtype=jnp.float32)
    out2 = jax.block_until_ready(channel_attention(x2, w1, b1, w2, b2))
    ref2 = _reference(x2, w1, b1, w2, b2)
    assert jnp.allclose(out2, ref2, atol=1e-5, rtol=1e-5), "ragged path mismatch"

    # 3) Spatially-tiled two-pass fallback, forced with tiny tiles (2 HW tiles,
    #    last one partial -> exercises the masked sum/max accumulation).
    out3 = jax.block_until_ready(
        channel_attention(x2, w1, b1, w2, b2,
                          force_tiled=True, target_block_bytes=1024))
    assert jnp.allclose(out3, ref2, atol=1e-5, rtol=1e-5), "tiled path mismatch"

    print("KERNEL_OK")
</pallas_src>

<mosaic_0001>
module attributes {stable_mosaic.version = 11 : i64} {
  func.func @_ca_fused_kernel(%arg0: i32, %arg1: memref<1x4x256xf32, #tpu.memory_space<vmem>>, %arg2: memref<4x8xf32, #tpu.memory_space<vmem>>, %arg3: memref<4x8xf32, #tpu.memory_space<vmem>>, %arg4: memref<1x8xf32, #tpu.memory_space<vmem>>, %arg5: memref<8x4xf32, #tpu.memory_space<vmem>>, %arg6: memref<1x4xf32, #tpu.memory_space<vmem>>, %arg7: memref<1x4x256xf32, #tpu.memory_space<vmem>>) attributes {dimension_semantics = [#tpu.dimension_semantics<parallel>], iteration_bounds = array<i64: 2>, scalar_prefetch = 0 : i64, scratch_operands = 0 : i64, tpu.core_type = #tpu.core_type<tc>, window_params = [{transform_indices = @transform_0, window_bounds = array<i64: 1, 4, 256>}, {pipeline_mode = #tpu.pipeline_mode<synchronous>, transform_indices = @transform_1, window_bounds = array<i64: 4, 8>}, {pipeline_mode = #tpu.pipeline_mode<synchronous>, transform_indices = @transform_2, window_bounds = array<i64: 4, 8>}, {pipeline_mode = #tpu.pipeline_mode<synchronous>, transform_indices = @transform_3, window_bounds = array<i64: 1, 8>}, {pipeline_mode = #tpu.pipeline_mode<synchronous>, transform_indices = @transform_4, window_bounds = array<i64: 8, 4>}, {pipeline_mode = #tpu.pipeline_mode<synchronous>, transform_indices = @transform_5, window_bounds = array<i64: 1, 4>}, {transform_indices = @transform_6, window_bounds = array<i64: 1, 4, 256>}]} {
    %c0 = arith.constant 0 : index
    %c0_0 = arith.constant 0 : index
    %c0_1 = arith.constant 0 : index
    %0 = vector.load %arg1[%c0, %c0_0, %c0_1] : memref<1x4x256xf32, #tpu.memory_space<vmem>>, vector<1x4x256xf32>
    %cst = arith.constant dense<0.000000e+00> : vector<1x4xf32>
    %1 = vector.multi_reduction <add>, %0, %cst [2] : vector<1x4x256xf32> to vector<1x4xf32>
    %cst_2 = arith.constant dense<0xFF800000> : vector<1x4xf32>
    %2 = vector.multi_reduction <maximumf>, %0, %cst_2 [2] : vector<1x4x256xf32> to vector<1x4xf32>
    %cst_3 = arith.constant 3.906250e-03 : f32
    %3 = vector.broadcast %cst_3 : f32 to vector<1x4xf32>
    %4 = arith.mulf %1, %3 : vector<1x4xf32>
    %c0_4 = arith.constant 0 : index
    %c0_5 = arith.constant 0 : index
    %5 = vector.load %arg2[%c0_4, %c0_5] : memref<4x8xf32, #tpu.memory_space<vmem>>, vector<4x8xf32>
    %c0_6 = arith.constant 0 : index
    %c0_7 = arith.constant 0 : index
    %6 = vector.load %arg3[%c0_6, %c0_7] : memref<4x8xf32, #tpu.memory_space<vmem>>, vector<4x8xf32>
    %c0_8 = arith.constant 0 : index
    %c0_9 = arith.constant 0 : index
    %7 = vector.load %arg4[%c0_8, %c0_9] : memref<1x8xf32, #tpu.memory_space<vmem>>, vector<1x8xf32>
    %c0_10 = arith.constant 0 : index
    %c0_11 = arith.constant 0 : index
    %8 = vector.load %arg5[%c0_10, %c0_11] : memref<8x4xf32, #tpu.memory_space<vmem>>, vector<8x4xf32>
    %c0_12 = arith.constant 0 : index
    %c0_13 = arith.constant 0 : index
    %9 = vector.load %arg6[%c0_12, %c0_13] : memref<1x4xf32, #tpu.memory_space<vmem>>, vector<1x4xf32>
    %cst_14 = arith.constant dense<0.000000e+00> : vector<1x8xf32>
    %10 = tpu.matmul %4, %5, %cst_14 {dimension_numbers = #tpu.dot_dimension_numbers<[1], [0], [0], [1], [0, 0, 1, 1], [], []>} : vector<1x4xf32>, vector<4x8xf32>, vector<1x8xf32> -> vector<1x8xf32>
    %cst_15 = arith.constant dense<0.000000e+00> : vector<1x8xf32>
    %11 = tpu.matmul %2, %6, %cst_15 {dimension_numbers = #tpu.dot_dimension_numbers<[1], [0], [0], [1], [0, 0, 1, 1], [], []>} : vector<1x4xf32>, vector<4x8xf32>, vector<1x8xf32> -> vector<1x8xf32>
    %12 = arith.addf %10, %11 : vector<1x8xf32>
    %13 = arith.addf %12, %7 : vector<1x8xf32>
    %cst_16 = arith.constant 0.000000e+00 : f32
    %14 = vector.broadcast %cst_16 : f32 to vector<1x8xf32>
    %15 = arith.maximumf %13, %14 : vector<1x8xf32>
    %cst_17 = arith.constant dense<0.000000e+00> : vector<1x4xf32>
    %16 = tpu.matmul %15, %8, %cst_17 {dimension_numbers = #tpu.dot_dimension_numbers<[1], [0], [0], [1], [0, 0, 1, 1], [], []>} : vector<1x8xf32>, vector<8x4xf32>, vector<1x4xf32> -> vector<1x4xf32>
    %17 = arith.addf %16, %9 : vector<1x4xf32>
    %18 = arith.negf %17 : vector<1x4xf32>
    %19 = math.exp %18 : vector<1x4xf32>
    %cst_18 = arith.constant 1.000000e+00 : f32
    %20 = vector.broadcast %cst_18 : f32 to vector<1x4xf32>
    %21 = arith.addf %20, %19 : vector<1x4xf32>
    %22 = arith.divf %20, %21 : vector<1x4xf32>
    %23 = vector.shape_cast %22 : vector<1x4xf32> to vector<1x4x1xf32>
    %24 = vector.broadcast %23 : vector<1x4x1xf32> to vector<1x4x256xf32>
    %25 = arith.mulf %0, %24 : vector<1x4x256xf32>
    %c0_19 = arith.constant 0 : index
    %c0_20 = arith.constant 0 : index
    %c0_21 = arith.constant 0 : index
    %26 = vector.load %arg7[%c0_19, %c0_20, %c0_21] : memref<1x4x256xf32, #tpu.memory_space<vmem>>, vector<1x4x256xf32>
    tpu.vector_store %arg7[%c0_19, %c0_20, %c0_21], %25 {strides = array<i32>} : memref<1x4x256xf32, #tpu.memory_space<vmem>>, vector<1x4x256xf32>,
    return
  }
  func.func @transform_0(%arg0: i32) -> (i32, i32, i32) {
    %c0_i32 = arith.constant 0 : i32
    %c0_i32_0 = arith.constant 0 : i32
    %c0_i32_1 = arith.constant 0 : i32
    return %arg0, %c0_i32, %c0_i32_0 : i32, i32, i32
  }
  func.func @transform_1(%arg0: i32) -> (i32, i32) {
    %c0_i32 = arith.constant 0 : i32
    %c0_i32_0 = arith.constant 0 : i32
    %c0_i32_1 = arith.constant 0 : i32
    return %c0_i32, %c0_i32_0 : i32, i32
  }
  func.func @transform_2(%arg0: i32) -> (i32, i32) {
    %c0_i32 = arith.constant 0 : i32
    %c0_i32_0 = arith.constant 0 : i32
    %c0_i32_1 = arith.constant 0 : i32
    return %c0_i32, %c0_i32_0 : i32, i32
  }
  func.func @transform_3(%arg0: i32) -> (i32, i32) {
    %c0_i32 = arith.constant 0 : i32
    %c0_i32_0 = arith.constant 0 : i32
    %c0_i32_1 = arith.constant 0 : i32
    return %c0_i32, %c0_i32_0 : i32, i32
  }
  func.func @transform_4(%arg0: i32) -> (i32, i32) {
    %c0_i32 = arith.constant 0 : i32
    %c0_i32_0 = arith.constant 0 : i32
    %c0_i32_1 = arith.constant 0 : i32
    return %c0_i32, %c0_i32_0 : i32, i32
  }
  func.func @transform_5(%arg0: i32) -> (i32, i32) {
    %c0_i32 = arith.constant 0 : i32
    %c0_i32_0 = arith.constant 0 : i32
    %c0_i32_1 = arith.constant 0 : i32
    return %c0_i32, %c0_i32_0 : i32, i32
  }
  func.func @transform_6(%arg0: i32) -> (i32, i32, i32) {
    %c0_i32 = arith.constant 0 : i32
    %c0_i32_0 = arith.constant 0 : i32
    %c0_i32_1 = arith.constant 0 : i32
    return %arg0, %c0_i32, %c0_i32_0 : i32, i32, i32
  }
}

</mosaic_0001>

<bundles_post_ra>
// kernel: tpu_custom_call.1
= control target key start
LH: loop header
LB: loop body
LE: loop exit
PB: predicated region body
PF: predicated region fallthrough
CT: control target
= control target key end

     0   :  { %11 = vsyncpa [#allocation3], 0  ;;  %s1068_s0 = inlined_call_operand.hbm [shape: f32[2,4,256], index: 0, kind: input, shape index: {}]   ;;  %s1069_s1 = inlined_call_operand.vmem [shape: f32[4,8], index: 1, kind: input, shape index: {}]   ;;  %s1070_s2 = inlined_call_operand.vmem [shape: f32[4,8], index: 2, kind: input, shape index: {}]   ;;  %s1071_s3 = inlined_call_operand.vmem [shape: f32[1,8], index: 3, kind: input, shape index: {}]   ;;  %s1072_s4 = inlined_call_operand.vmem [shape: f32[8,4], index: 4, kind: input, shape index: {}]   ;;  %s1073_s5 = inlined_call_operand.vmem [shape: f32[1,4], index: 5, kind: input, shape index: {}]   ;;  %s1074_s6 = inlined_call_operand.hbm [shape: f32[2,4,256], index: 6, kind: output, shape index: {}]  }
   0x1   :  { %13 = vsyncpa [#allocation3 + $0x1], 0 }
   0x2   :  { %14 = vsyncpa [#allocation4], 0 }
   0x3   :  { %16 = vsyncpa [#allocation4 + $0x1], 0  ;;  %s872_s21 = smov 0   ;;  %s874_s22 = smov 0  }
   0x4   :  { %s876_s23 = smov 0   ;;  %s878_s24 = smov 0  }
   0x5 LB: > { %s893_s25 = sadd.s32 4294967295, %s830_s24   ;;  %s637_s26 = sadd.s32 4294967294, %s830_s24   ;;  %s830_s24 = sphi %s878_s24, %s1089_s24   ;;  %s826_s23 = sphi %s876_s23, %s1088_s23   ;;  %s822_s22 = sphi %s874_s22, %s1087_s22   ;;  %s818_s21 = sphi %s872_s21, %s1086_s21  }
   0x6   : > { %s897_s27 = sadd.s32 1, %s830_s24   ;;  %s29_s28 = sadd.s32 1, %s826_s23 }
   0x7   : > { %s26_s29 = ssub.s32 %s830_s24, %s897_s27  ;;  %p36_p0 = scmp.ne.s32.totalorder %s826_s23, %s822_s22 }
   0x8   : > { %p27_p1 = scmp.eq.s32.totalorder %s26_s29, 0  ;;  %p37_p2 = scmp.eq.s32.totalorder %s830_s24, 0 }
   0x9   : > { %p42_p3 = scmp.ne.s32.totalorder %s822_s22, %s818_s21  ;;  %p43_p4 = scmp.eq.s32.totalorder %s893_s25, 0 }
   0xa   : > { %s909_s30 = scalar_select %p27_p1, %s826_s23, %s29_s28  }
   0xb   : > { %p911_p5 = por %p37_p2, %p36_p0  ;;  %p915_p6 = por %p43_p4, %p42_p3 }
   0xc   : > { %p171_p7 = scmp.eq.s32.totalorder %s893_s25, 1  ;;  %p177_p8 = scmp.eq.s32.totalorder %s637_s26, 1 }
   0xd   : > { %p692_p10 = scmp.lt.s32.totalorder %s830_s24, 2  ;;  %s212_s11 = sand.u32 1, %s826_s23  }
   0xe   : > { %p922_p11 = por %p171_p7, %p36_p0  ;;  %p926_p12 = por %p177_p8, %p42_p3 }
   0xf   : > { %s657_s12 = sshll.u32 %s830_s24, 7  ;;  %s640_s13 = sshll.u32 %s212_s11, 3 }
  0x10   : > { %s1078_s9 = scalar_select %p922_p11, 1, 0 }
  0x11   : > { %s1079_s10 = scalar_select %p926_p12, 1, 0 }
  0x12   : > { %s935_s16 = scalar_lea.hbm %s1068_s0, %s657_s12  ;;  %s216_s17 = scalar_lea.vmem [#allocation2], %s640_s13 }
  0x13   : > { %s224_s18 = sshll.u32 %s216_s17, 4  ;;  %p939_p13 = pnand %p692_p10, %p911_p5  ;;  %s943_s18 = int_to_ptr.vmem [resolvable:$true] %s224_s18 }
  0x14   : > { %s213_s20 = scalar_lea.sflag [#allocation3], %s212_s11  ;;  %s734_s26 = scalar_lea.hbm %s935_s16, 128 }
  0x15   : > { %p735_p2 = scmp.ne.s32.totalorder %s935_s16, %s734_s26  ;;  %p736_p3 = pneg %p939_p13 }
  0x16   : > { %s739_s7 = scalar_lea.hbm %s1068_s0, 256  ;;  %p740_p5 = scmp.lt.u32.totalorder %s935_s16, %s1068_s0 }
  0x17   : > { %p737_p4 = pnand %p736_p3, %p735_p2  ;;  %p741_p8 = scmp.lt.u32.totalorder %s739_s7, %s734_s26 }
  0x18   : > { %p743_p9 = scmp.lt.u32.totalorder %s734_s26, %s935_s16 }
  0x19   : > { %p738_p7 = pneg %p737_p4  ;;  %p742_p10 = por %p741_p8, %p740_p5 }
  0x1b   : > { %p744_p0 = por %p743_p9, %p742_p10 }
  0x1d   : > { %p745_p1 = pnand %p744_p0, %p738_p7 }
  0x1f   : > { %748 = shalt.err (!%p745_p1)
}
  0x20   : > { %s749_s11 = scalar_lea.vmem %s943_s18, 128  ;;  %s832_s14 = smov [#allocation2]  }
  0x21   : > { %p750_p2 = scmp.ne.s32.totalorder %s943_s18, %s749_s11  ;;  %s754_s15 = sshll.u32 %s832_s14, 4  ;;  %s755_s15 = int_to_ptr.vmem [resolvable:$false] %s754_s15 }
  0x22   : > { %s756_s17 = scalar_lea.vmem %s755_s15, 256  ;;  %p757_p11 = scmp.lt.s32.totalorder %s943_s18, %s755_s15 }
  0x23   : > { %p752_p4 = pnand %p750_p2, %p736_p3  ;;  %p758_p5 = scmp.lt.s32.totalorder %s756_s17, %s749_s11 }
  0x25   : > { %p753_p12 = pneg %p752_p4  ;;  %p759_p8 = por %p758_p5, %p757_p11 }
  0x27   : > { %p760_p9 = pnand %p759_p8, %p753_p12 }
  0x29   : > { %763 = shalt.err (!%p760_p9)
}
  0x2a   : > { %687 = dma.hbm_to_vmem [thread:$0]  (!%p939_p13), %s935_s16, 128, %s943_s18, %s213_s20  }
  0x2b   : > { %p1081_p0 = scmp.lt.s32.totalorder %s830_s24, 3  ;;  %p1082_p1 = scmp.ge.s32.totalorder %s830_s24, 1 }
  0x2d   : > { %p230_p3 = pnand %p1082_p1, %p1081_p0 }
  0x2e   : > { %s977_s26 = sand.u32 (!%p230_p3), 1, %s822_s22  }
  0x2f   : > { %233 = sbr.rel (%p230_p3) target bundleno = 802 (0x322), region = 44  ;;  %s644_s28 = sshll.u32 (!%p230_p3), %s977_s26, 3 }
  0x30   : > { %s236_s29 = scalar_lea.sflag (!%p230_p3), [#allocation3], %s977_s26  ;;  %s239_s19 = scalar_lea.vmem (!%p230_p3), [#allocation2], %s644_s28 }
  0x36   : > { %809 = dma.done.wait (%p915_p6), %s236_s29, 128  }
  0x37   : > { %811 = vsyncadd (%p915_p6), %s236_s29, 4294967168  ;;  %vm272_vm0 = vcmask 1043456   ;;  %v987_v0 = vld [vmem:[%s239_s19] sm:$0xff]  ;;  %v833_v8 = vmov 0.0   ;;  %vm834_vm1 = vmmov 0   ;;  %v290_v11 = vlaneseq  ;;  %s658_s17 = sshll.u32 %s893_s25, 7 }
  0x38   : > { %v270_v1 = vcombine.high %v987_v0, %v987_v0  ;;  %v273_v2 = vsel %vm272_vm0, %v987_v0, 0.0  ;;  %v278_v4 = vsel %vm272_vm0, %v987_v0, -inf  ;;  %670 = vmatprep.subr.mxu1 %v833_v8  ;;  %v284_v9 = vld [vmem:[%s1069_s1] sm:$0xf]  ;;  %665 = vmatprep.subr.mxu0 %v833_v8  ;;  %vm296_vm2 = vcmask 31744   ;;  %s267_s29 = scalar_lea.vmem [#allocation5], %s644_s28  ;;  %s1024_s18 = scalar_lea.hbm %s1074_s6, %s658_s17 }
  0x39   : > { %671 = vmatpush3.msk.msra.mxu1 %vm272_vm0, %v284_v9  ;;  %672 = vmatprep.mubr.msk.f32.mxu1 %vm834_vm1, %v833_v8  ;;  %v285_v10 = vld [vmem:[%s1070_s2] sm:$0xf]  ;;  %v291_v12 = vand.u32 127, %v290_v11  ;;  %v293_v13 = vshrl.u32 %v290_v11, 7  ;;  %vm454_vm3 = vcmask 64512   ;;  %s567_s19 = sshll.u32 %s267_s29, 4  ;;  %s1026_s19 = int_to_ptr.vmem [resolvable:$true] %s567_s19 }
  0x3a   : > { %v274_v3 = vsel %vm272_vm0, %v270_v1, 0.0  ;;  %v279_v5 = vsel %vm272_vm0, %v270_v1, -inf  ;;  %667 = vmatprep.mubr.msk.f32.mxu0 %vm834_vm1, %v833_v8  ;;  %666 = vmatpush3.msk.msra.mxu0 %vm272_vm0, %v285_v10  ;;  %v287_v20 = vld [vmem:[%s1072_s4] sm:$0xff]  ;;  %v835_v39 = vmov 839922192   ;;  %s553_s20 = scalar_lea.sflag [#allocation4], %s977_s26 }
  0x3b   : > { %v275_v6 = vadd.f32 %v274_v3, %v273_v2  ;;  %v280_v7 = vmax.f32 %v278_v4, %v279_v5  ;;  %675 = vmatprep.subr.mxu0 %v833_v8  ;;  %v294_v14 = vsub.s32 %v291_v12, %v293_v13  ;;  %v286_v23 = vld [vmem:[%s1071_s3] sm:$0x1]  ;;  %v536_v36 = vsub.s32 0, %v293_v13  ;;  %s764_s7 = scalar_lea.vmem %s1026_s19, 128  ;;  %p1083_p11 = scmp.ne.s32.totalorder %s1078_s9, 0 }
  0x3c   : > { %v288_v29 = vld [vmem:[%s1073_s5] sm:$0x1]  ;;  %v543_v40 = vunpack.c.l.s4 %v835_v39  ;;  %p765_p6 = scmp.ne.s32.totalorder %s1026_s19, %s764_s7  ;;  %s836_s25 = smov [#allocation5]  }
  0x3d   : > { %276 = vadd.xlane.f32.xlu0 %v275_v6  ;;  %s768_s28 = sshll.u32 %s836_s25, 4  ;;  %s769_s28 = int_to_ptr.vmem [resolvable:$false] %s768_s28 }
  0x3e   : > { %v544_v41 = vunpack.c.0.s8 %v543_v40  ;;  %p766_p12 = pnand %p765_p6, %p1083_p11  ;;  %s770_s12 = scalar_lea.vmem %s769_s28, 256 }
  0x3f   : > { %p771_p7 = scmp.lt.s32.totalorder %s1026_s19, %s769_s28  ;;  %p772_p10 = scmp.lt.s32.totalorder %s770_s12, %s764_s7 }
  0x40   : > { %v547_v42 = vsub.s32 %v544_v41, %v293_v13  ;;  %p767_p13 = pneg %p766_p12 }
  0x41   : > { %281 = vmax.xlane.f32.xlu0 %v280_v7  ;;  %p773_p2 = por %p772_p10, %p771_p7 }
  0x43   : > { %p774_p4 = pnand %p773_p2, %p767_p13 }
  0xca   : > { %v277_v15 = vpop.xlane.xlu0 %276 }
  0xcb   : > { %v283_v16 = vmul.f32 0.00390625, %v277_v15 }
  0xcd   : > { %v376_v17 = vrot.slane %v283_v16, %v294_v14 }
  0xce   : > { %v282_v18 = vpop.xlane.xlu0 %281 }
  0xcf   : > { %v295_v19 = vrot.slane %v282_v18, %v294_v14  ;;  %673 = vmatmul.mubr.msk.f32.vlgmr.msra.gmra.mrb[0].mxu1 %vm296_vm2, %v376_v17 }
  0xd1   : > { %668 = vmatmul.mubr.msk.f32.vlgmr.msra.gmra.mrb[0].mxu0 %vm296_vm2, %v295_v19 }
  0xd2   : > { %677 = vmatprep.mubr.msk.f32.mxu0 %vm834_vm1, %v833_v8  ;;  %676 = vmatpush3.msra.mxu0 %v287_v20 }
 0x1a2   : > { %v448_v21 = vpop.f32.mrb[0].mxu1 }
 0x1a3   : > { %v674_v22 = vpop.f32.mrb[1].mxu1 }
 0x1a4   : > { %v368_v24 = vpop.f32.mrb[0].mxu0 }
 0x1a5   : > { %v449_v25 = vadd.f32 %v448_v21, %v368_v24  ;;  %v669_v26 = vpop.f32.mrb[1].mxu0 }
 0x1a7   : > { %v452_v27 = vadd.f32 %v449_v25, %v286_v23 }
 0x1a9   : > { %v453_v28 = vmax.f32 %v452_v27, 0.0 }
 0x1ab   : > { %678 = vmatmul.mubr.msk.f32.vlgmr.msra.gmra.mrb[2].mxu0 %vm454_vm3, %v453_v28 }
 0x27e   : > { %v524_v30 = vpop.f32.mrb[2].mxu0 }
 0x27f   : > { %v525_v31 = vadd.f32 %v524_v30, %v288_v29  ;;  %v679_v32 = vpop.f32.mrb[3].mxu0 }
 0x281   : > { %v651_v33 = vmul.f32 -1.442695, %v525_v31 }
 0x283   : > { %730 = vpow2.f32 %v651_v33 }
 0x28d   : > { %v731_v34 = vpop.eup %730 }
 0x28e   : > { %v531_v35 = vadd.f32 1.0, %v731_v34 }
 0x290   : > { %732 = vrcp.f32 %v531_v35 }
 0x29a   : > { %v733_v37 = vpop.eup %732 }
 0x29b   : > { %v537_v38 = vrot.slane %v733_v37, %v536_v36 }
 0x29d   : > { %539 = vbcast.lane.b32.xlu1 %v537_v38, 256 }
 0x30f   : > { %v540_v43 = vpop.permute.xlu1 %539 }
 0x310   : > { %v548_v44 = vrot.slane %v540_v43, %v547_v42 }
 0x312   : > { %v550_v45 = vmul.f32 %v548_v44, %v987_v0 }
 0x314   : > { %551 = vst [vmem:[%s267_s29] sm:$0xff] %v550_v45 }
 0x315   : > { %777 = shalt.err (!%p774_p4)
}
 0x316   : > { %s778_s26 = scalar_lea.hbm %s1024_s18, 128  ;;  %s782_s14 = scalar_lea.hbm %s1074_s6, 256 }
 0x317   : > { %p779_p5 = scmp.ne.s32.totalorder %s1024_s18, %s778_s26  ;;  %p783_p0 = scmp.lt.u32.totalorder %s1024_s18, %s1074_s6 }
 0x318   : > { %p784_p1 = scmp.lt.u32.totalorder %s782_s14, %s778_s26  ;;  %p786_p6 = scmp.lt.u32.totalorder %s778_s26, %s1024_s18 }
 0x319   : > { %p780_p8 = pnand %p779_p5, %p1083_p11 }
 0x31a   : > { %p785_p3 = por %p784_p1, %p783_p0 }
 0x31b   : > { %p781_p9 = pneg %p780_p8 }
 0x31c   : > { %p787_p12 = por %p786_p6, %p785_p3 }
 0x31e   : > { %p788_p13 = pnand %p787_p12, %p781_p9 }
 0x320   : > { %791 = shalt.err (!%p788_p13)
}
 0x321   : > { %682 = dma.vmem_to_hbm [thread:$0]  (%p1083_p11), %s1026_s19, 128, %s1024_s18, %s553_s20  }
 0x322 PF: > { %s579_s29 = sand.u32 1, %s818_s21   ;;  %p1084_p7 = scmp.ne.s32.totalorder %s1079_s10, 0 }
 0x323   : > { %p1085_p10 = scmp.ge.s32.totalorder %s830_s24, 2  ;;  %s580_s8 = scalar_lea.sflag [#allocation4], %s579_s29 }
 0x325   : > { %p689_p2 = pnand %p1085_p10, %p1084_p7 }
 0x327   : > { %813 = dma.done.wait (!%p689_p2), %s580_s8, 128  }
 0x328   : > { %815 = vsyncadd (!%p689_p2), %s580_s8, 4294967168  ;;  %p19_p4 = scmp.ge.s32.totalorder %s897_s27, 4   ;;  %s1086_s21 = smov %s822_s22 }
 0x329   : > { %s1087_s22 = smov %s826_s23  ;;  %s1088_s23 = smov %s909_s30 }
 0x32a   : > { %s1089_s24 = smov %s897_s27  ;;  %21 = sbr.rel (!%p19_p4) target bundleno = 5 (0x5), region = 89 }
 0x331   :  { %585 = vsyncpa [#allocation3], 1 }
 0x332   :  { %587 = vsyncpa [#allocation3 + $0x1], 1 }
 0x333   :  { %588 = vsyncpa [#allocation4], 1 }
 0x334   :  { %590 = vsyncpa [#allocation4 + $0x1], 1 }

</bundles_post_ra>
